<compile_context>
chip_gen: v7x
topology: tpu7x:2x2x1
jax: 0.10.0
libtpu: 0.0.40
codegen_flags: <defaults>
</compile_context>

<pallas_src>
import functools
import math

import jax
import jax.numpy as jnp
from jax.experimental import pallas as pl
from jax.experimental.pallas import tpu as pltpu


_HALO = 128  # zero halo (lanes) on each side of the flattened image; needs W + 1 <= 128


def _ghost_kernel(x_ref, w_ref, scale_ref, bias_ref, out_ref, xp_ref, p_ref,
                  *, width, init_ch, oup):
    """One batch tile per grid step.

    x_ref:     (B_tile, Cin, H*W)     bf16  flattened NCHW input
    w_ref:     (Cout, 9*Cin)          bf16  conv weights, K index = (ky*3+kx)*Cin + c
    scale_ref: (Cout, 1)              f32   folded BN scale = gamma / sqrt(var + eps)
    bias_ref:  (Cout, 1)              f32   folded BN bias  = beta - mean * scale
    out_ref:   (B_tile, oup, H*W)     f32   [x1 ; x1[:oup-Cout]] (ghost dup fused)
    xp_ref:    (Cin, 2*HALO + H*W)    f32   zero-haloed image scratch
    p_ref:     (9*Cin, H*W)           f32   im2col operand scratch
    """
    b_tile, cin, hw = x_ref.shape

    # Column-index masks for the horizontally shifted taps (hoisted out of loops).
    col = jax.lax.broadcasted_iota(jnp.int32, (1, hw), 1) % width
    left_ok = col >= 1             # source column w-1 inside the image
    right_ok = col < (width - 1)   # source column w+1 inside the image

    w_mat = w_ref[...]             # (Cout, 9*Cin) bf16 -- MXU operand
    scale = scale_ref[...]         # (Cout, 1) f32
    bias = bias_ref[...]           # (Cout, 1) f32

    # Zero the haloed scratch once per grid step; images overwrite only the middle.
    xp_ref[...] = jnp.zeros_like(xp_ref)

    for bb in range(b_tile):
        # Place the flattened image at a 128-aligned lane offset inside the zero halo.
        xp_ref[:, _HALO:_HALO + hw] = x_ref[bb].astype(jnp.float32)

        # im2col: P[(ky*3+kx)*Cin + c, h*W + w] = x[c, h+dy, w+dx]  (0 outside image).
        # Out-of-image rows read the zero halo; out-of-image columns are masked.
        tap_idx = 0
        for dy in (-1, 0, 1):
            for dx in (-1, 0, 1):
                shift = dy * width + dx
                tap = xp_ref[:, _HALO + shift:_HALO + shift + hw]   # (Cin, H*W) f32
                if dx == -1:
                    tap = jnp.where(left_ok, tap, 0.0)
                elif dx == 1:
                    tap = jnp.where(right_ok, tap, 0.0)
                p_ref[tap_idx * cin:(tap_idx + 1) * cin, :] = tap
                tap_idx += 1

        # Single K = 9*Cin contraction on the MXU (bf16 inputs, f32 accumulation),
        # lane-dense N = H*W result.
        acc = jnp.dot(w_mat, p_ref[...].astype(jnp.bfloat16),
                      preferred_element_type=jnp.float32)           # (Cout, H*W) f32

        # Fused BatchNorm (eval, folded) + ReLU epilogue in f32.
        y = jnp.maximum(acc * scale + bias, 0.0)

        # Ghost duplication: out = concat([x1, x1], channel)[:oup]   (x2 == x1).
        out_ref[bb, :init_ch, :] = y.astype(out_ref.dtype)
        rem = oup - init_ch
        if rem > 0:
            out_ref[bb, init_ch:init_ch + rem, :] = y[:rem, :].astype(out_ref.dtype)


def _pick_batch_tile(n):
    """Images per grid step: amortize per-step overhead for big batches, but keep
    >= 2 parallel grid steps so both v7x TensorCores get work."""
    if n <= 2:
        return 1
    for cand in range(n // 2, 0, -1):
        if n % cand == 0:
            return cand
    return 1


def ghost_module_forward(x_nchw, params, oup, eps=1e-5):
    """GhostModule.forward (eval-mode BN).  NCHW in / NCHW out, like the PyTorch module."""
    n, cin, h, w = x_nchw.shape
    conv_w = params["conv_w"]                       # (init_ch, Cin, 3, 3)
    init_ch = conv_w.shape[0]
    hw = h * w
    if w + 1 > _HALO:
        raise NotImplementedError("GhostModule kernel assumes W + 1 <= 128")
    # TODO(synk): for real GhostNet shapes (H,W up to 112, hundreds of channels) add a
    # spatial-row grid axis and size tiles against v7x's 64 MiB VMEM (vmem_limit_bytes).

    # Flattened-NCHW, bf16 activations (halves HBM->VMEM DMA).  Reshape is free.
    x_flat = x_nchw.reshape(n, cin, hw).astype(jnp.bfloat16)

    # OIHW -> (Cout, 9*Cin), K index = (ky*3 + kx)*Cin + c, bf16 for the MXU.
    w2d = jnp.transpose(conv_w, (0, 2, 3, 1)).reshape(init_ch, 9 * cin).astype(jnp.bfloat16)

    # Fold eval-mode BatchNorm (running stats) into per-channel scale / bias (f32).
    scale = (params["bn_gamma"] / jnp.sqrt(params["bn_var"] + eps)).astype(jnp.float32)
    bias = (params["bn_beta"] - params["bn_mean"] * scale).astype(jnp.float32)
    scale2d = scale.reshape(init_ch, 1)
    bias2d = bias.reshape(init_ch, 1)

    b_tile = _pick_batch_tile(n)
    grid = (n // b_tile,)

    kernel = functools.partial(_ghost_kernel, width=w, init_ch=init_ch, oup=oup)

    bytes_accessed = (x_flat.size * 2            # bf16 input
                      + w2d.size * 2             # bf16 weights
                      + (scale2d.size + bias2d.size) * 4
                      + n * oup * hw * 4)        # f32 output

    out_flat = pl.pallas_call(
        kernel,
        out_shape=jax.ShapeDtypeStruct((n, oup, hw), jnp.float32),
        grid=grid,
        in_specs=[
            pl.BlockSpec((b_tile, cin, hw), lambda b: (b, 0, 0)),
            pl.BlockSpec((init_ch, 9 * cin), lambda b: (0, 0)),
            pl.BlockSpec((init_ch, 1), lambda b: (0, 0)),
            pl.BlockSpec((init_ch, 1), lambda b: (0, 0)),
        ],
        out_specs=pl.BlockSpec((b_tile, oup, hw), lambda b: (b, 0, 0)),
        scratch_shapes=[
            pltpu.VMEM((cin, 2 * _HALO + hw), jnp.float32),   # zero-haloed image
            pltpu.VMEM((9 * cin, hw), jnp.float32),           # im2col operand
        ],
        compiler_params=pltpu.CompilerParams(
            dimension_semantics=("parallel",)),
        cost_estimate=pl.CostEstimate(
            flops=2 * n * hw * 9 * cin * init_ch,
            transcendentals=0,
            bytes_accessed=bytes_accessed),
    )(x_flat, w2d, scale2d, bias2d)

    # Free reshape back to NCHW -- no transposes anywhere in the wrapper.
    return out_flat.reshape(n, oup, h, w)


def init_ghost_params(key, inp, oup, kernel_size=3, ratio=2):
    init_channels = math.ceil(oup / ratio)
    k_w, k_g, k_b, k_m, k_v = jax.random.split(key, 5)
    params = {
        "conv_w": jax.random.normal(
            k_w, (init_channels, inp, kernel_size, kernel_size), jnp.float32) * 0.1,
        "bn_gamma": 1.0 + 0.1 * jax.random.normal(k_g, (init_channels,), jnp.float32),
        "bn_beta": 0.1 * jax.random.normal(k_b, (init_channels,), jnp.float32),
        "bn_mean": 0.1 * jax.random.normal(k_m, (init_channels,), jnp.float32),
        "bn_var": 1.0 + 0.1 * jnp.abs(jax.random.normal(k_v, (init_channels,), jnp.float32)),
    }
    return params, init_channels


def _reference_forward(x, params, oup, eps=1e-5, compute_dtype=jnp.float32):
    """Pure-JAX reference (NCHW, PyTorch eval semantics).  compute_dtype lets the
    check mirror the kernel's bf16 matmul inputs exactly."""
    y = jax.lax.conv_general_dilated(
        x.astype(compute_dtype), params["conv_w"].astype(compute_dtype),
        window_strides=(1, 1), padding=((1, 1), (1, 1)),
        dimension_numbers=("NCHW", "OIHW", "NCHW"),
        preferred_element_type=jnp.float32)
    scale = params["bn_gamma"] / jnp.sqrt(params["bn_var"] + eps)
    bias = params["bn_beta"] - params["bn_mean"] * scale
    y = y * scale[None, :, None, None] + bias[None, :, None, None]
    x1 = jnp.maximum(y, 0.0)
    return jnp.concatenate([x1, x1], axis=1)[:, :oup, :, :]


if __name__ == "__main__":
    # Small config consistent with the module: GhostModule(inp=4, oup=8)
    inp, oup = 4, 8
    N, H, W = 2, 16, 16

    key = jax.random.PRNGKey(0)
    k_x, k_p = jax.random.split(key)
    x = jax.random.normal(k_x, (N, inp, H, W), jnp.float32)   # NCHW like PyTorch
    params, init_channels = init_ghost_params(k_p, inp, oup)

    fwd = jax.jit(functools.partial(ghost_module_forward, oup=oup))
    out = jax.block_until_ready(fwd(x, params))
    assert out.shape == (N, oup, H, W), out.shape

    # Tight check vs a reference using the same bf16 matmul inputs as the kernel.
    ref_bf16 = _reference_forward(x, params, oup, compute_dtype=jnp.bfloat16)
    err_bf16 = float(jnp.max(jnp.abs(out - ref_bf16)))
    assert err_bf16 < 1e-2, err_bf16

    # Loose check vs full-f32 module semantics (gap == bf16 input rounding only).
    ref_f32 = _reference_forward(x, params, oup, compute_dtype=jnp.float32)
    err_f32 = float(jnp.max(jnp.abs(out - ref_f32)))
    assert err_f32 < 5e-2, err_f32

    print("KERNEL_OK")
</pallas_src>

<mosaic_0001>
module attributes {stable_mosaic.version = 11 : i64} {
  func.func @_ghost_kernel(%arg0: i32, %arg1: memref<1x4x256xbf16, #tpu.memory_space<vmem>>, %arg2: memref<4x36xbf16, #tpu.memory_space<vmem>>, %arg3: memref<4x1xf32, #tpu.memory_space<vmem>>, %arg4: memref<4x1xf32, #tpu.memory_space<vmem>>, %arg5: memref<1x8x256xf32, #tpu.memory_space<vmem>>, %arg6: memref<4x512xf32, #tpu.memory_space<vmem>>, %arg7: memref<36x256xf32, #tpu.memory_space<vmem>>) attributes {dimension_semantics = [#tpu.dimension_semantics<parallel>], iteration_bounds = array<i64: 2>, scalar_prefetch = 0 : i64, scratch_operands = 2 : i64, tpu.core_type = #tpu.core_type<tc>, window_params = [{transform_indices = @transform_0, window_bounds = array<i64: 1, 4, 256>}, {pipeline_mode = #tpu.pipeline_mode<synchronous>, transform_indices = @transform_1, window_bounds = array<i64: 4, 36>}, {pipeline_mode = #tpu.pipeline_mode<synchronous>, transform_indices = @transform_2, window_bounds = array<i64: 4, 1>}, {pipeline_mode = #tpu.pipeline_mode<synchronous>, transform_indices = @transform_3, window_bounds = array<i64: 4, 1>}, {transform_indices = @transform_4, window_bounds = array<i64: 1, 8, 256>}]} {
    %0 = tpu.iota {dimensions = array<i32: 1>} : vector<1x256xi32>
    %c16_i32 = arith.constant 16 : i32
    %c0_i32 = arith.constant 0 : i32
    %1 = arith.cmpi eq, %c16_i32, %c0_i32 : i32
    %c1_i32 = arith.constant 1 : i32
    %2 = arith.select %1, %c1_i32, %c16_i32 : i32
    %3 = vector.broadcast %2 : i32 to vector<1x256xi32>
    %4 = arith.remsi %0, %3 : vector<1x256xi32>
    %c0_i32_0 = arith.constant 0 : i32
    %5 = vector.broadcast %c0_i32_0 : i32 to vector<1x256xi32>
    %6 = arith.cmpi ne, %4, %5 : vector<1x256xi32>
    %c0_i32_1 = arith.constant 0 : i32
    %7 = vector.broadcast %c0_i32_1 : i32 to vector<1x256xi32>
    %8 = arith.cmpi slt, %4, %7 : vector<1x256xi32>
    %c0_i32_2 = arith.constant 0 : i32
    %9 = arith.cmpi slt, %2, %c0_i32_2 : i32
    %10 = vector.broadcast %9 : i1 to vector<1x256xi1>
    %11 = vector.broadcast %10 : vector<1x256xi1> to vector<1x256xi1>
    %12 = arith.xori %8, %11 : vector<1x256xi1>
    %13 = arith.andi %12, %6 : vector<1x256xi1>
    %14 = vector.broadcast %2 : i32 to vector<1x256xi32>
    %15 = arith.addi %4, %14 : vector<1x256xi32>
    %16 = arith.select %13, %15, %4 : vector<1x256xi1>, vector<1x256xi32>
    %c1_i32_3 = arith.constant 1 : i32
    %17 = vector.broadcast %c1_i32_3 : i32 to vector<1x256xi32>
    %18 = arith.cmpi sge, %16, %17 : vector<1x256xi32>
    %c15_i32 = arith.constant 15 : i32
    %19 = vector.broadcast %c15_i32 : i32 to vector<1x256xi32>
    %20 = arith.cmpi slt, %16, %19 : vector<1x256xi32>
    %c0 = arith.constant 0 : index
    %c0_4 = arith.constant 0 : index
    %21 = vector.load %arg2[%c0, %c0_4] : memref<4x36xbf16, #tpu.memory_space<vmem>>, vector<4x36xbf16>
    %c0_5 = arith.constant 0 : index
    %c0_6 = arith.constant 0 : index
    %22 = vector.load %arg3[%c0_5, %c0_6] : memref<4x1xf32, #tpu.memory_space<vmem>>, vector<4x1xf32>
    %c0_7 = arith.constant 0 : index
    %c0_8 = arith.constant 0 : index
    %23 = vector.load %arg4[%c0_7, %c0_8] : memref<4x1xf32, #tpu.memory_space<vmem>>, vector<4x1xf32>
    %cst = arith.constant 0.000000e+00 : f32
    %24 = vector.broadcast %cst : f32 to vector<4x512xf32>
    %c0_9 = arith.constant 0 : index
    %c0_10 = arith.constant 0 : index
    %25 = vector.load %arg6[%c0_9, %c0_10] : memref<4x512xf32, #tpu.memory_space<vmem>>, vector<4x512xf32>
    tpu.vector_store %arg6[%c0_9, %c0_10], %24 {strides = array<i32>} : memref<4x512xf32, #tpu.memory_space<vmem>>, vector<4x512xf32>,
    %c0_11 = arith.constant 0 : index
    %c0_12 = arith.constant 0 : index
    %c0_13 = arith.constant 0 : index
    %26 = vector.load %arg1[%c0_11, %c0_12, %c0_13] : memref<1x4x256xbf16, #tpu.memory_space<vmem>>, vector<1x4x256xbf16>
    %27 = vector.shape_cast %26 : vector<1x4x256xbf16> to vector<4x256xbf16>
    %28 = arith.extf %27 : vector<4x256xbf16> to vector<4x256xf32>
    %c0_14 = arith.constant 0 : index
    %c128 = arith.constant 128 : index
    %29 = vector.load %arg6[%c0_14, %c128] : memref<4x512xf32, #tpu.memory_space<vmem>>, vector<4x256xf32>
    tpu.vector_store %arg6[%c0_14, %c128], %28 {strides = array<i32>} : memref<4x512xf32, #tpu.memory_space<vmem>>, vector<4x256xf32>,
    %c0_15 = arith.constant 0 : index
    %c111 = arith.constant 111 : index
    %30 = vector.load %arg6[%c0_15, %c111] : memref<4x512xf32, #tpu.memory_space<vmem>>, vector<4x256xf32>
    %cst_16 = arith.constant 0.000000e+00 : f32
    %31 = vector.shape_cast %18 : vector<1x256xi1> to vector<1x256xi1>
    %32 = vector.broadcast %31 : vector<1x256xi1> to vector<4x256xi1>
    %33 = vector.broadcast %cst_16 : f32 to vector<4x256xf32>
    %34 = arith.select %32, %30, %33 : vector<4x256xi1>, vector<4x256xf32>
    %c0_17 = arith.constant 0 : index
    %c0_18 = arith.constant 0 : index
    %35 = vector.load %arg7[%c0_17, %c0_18] : memref<36x256xf32, #tpu.memory_space<vmem>>, vector<4x256xf32>
    tpu.vector_store %arg7[%c0_17, %c0_18], %34 {strides = array<i32>} : memref<36x256xf32, #tpu.memory_space<vmem>>, vector<4x256xf32>,
    %c0_19 = arith.constant 0 : index
    %c112 = arith.constant 112 : index
    %36 = vector.load %arg6[%c0_19, %c112] : memref<4x512xf32, #tpu.memory_space<vmem>>, vector<4x256xf32>
    %c4 = arith.constant 4 : index
    %c0_20 = arith.constant 0 : index
    %37 = vector.load %arg7[%c4, %c0_20] : memref<36x256xf32, #tpu.memory_space<vmem>>, vector<4x256xf32>
    tpu.vector_store %arg7[%c4, %c0_20], %36 {strides = array<i32>} : memref<36x256xf32, #tpu.memory_space<vmem>>, vector<4x256xf32>,
    %c0_21 = arith.constant 0 : index
    %c113 = arith.constant 113 : index
    %38 = vector.load %arg6[%c0_21, %c113] : memref<4x512xf32, #tpu.memory_space<vmem>>, vector<4x256xf32>
    %cst_22 = arith.constant 0.000000e+00 : f32
    %39 = vector.shape_cast %20 : vector<1x256xi1> to vector<1x256xi1>
    %40 = vector.broadcast %39 : vector<1x256xi1> to vector<4x256xi1>
    %41 = vector.broadcast %cst_22 : f32 to vector<4x256xf32>
    %42 = arith.select %40, %38, %41 : vector<4x256xi1>, vector<4x256xf32>
    %c8 = arith.constant 8 : index
    %c0_23 = arith.constant 0 : index
    %43 = vector.load %arg7[%c8, %c0_23] : memref<36x256xf32, #tpu.memory_space<vmem>>, vector<4x256xf32>
    tpu.vector_store %arg7[%c8, %c0_23], %42 {strides = array<i32>} : memref<36x256xf32, #tpu.memory_space<vmem>>, vector<4x256xf32>,
    %c0_24 = arith.constant 0 : index
    %c127 = arith.constant 127 : index
    %44 = vector.load %arg6[%c0_24, %c127] : memref<4x512xf32, #tpu.memory_space<vmem>>, vector<4x256xf32>
    %cst_25 = arith.constant 0.000000e+00 : f32
    %45 = vector.shape_cast %18 : vector<1x256xi1> to vector<1x256xi1>
    %46 = vector.broadcast %45 : vector<1x256xi1> to vector<4x256xi1>
    %47 = vector.broadcast %cst_25 : f32 to vector<4x256xf32>
    %48 = arith.select %46, %44, %47 : vector<4x256xi1>, vector<4x256xf32>
    %c12 = arith.constant 12 : index
    %c0_26 = arith.constant 0 : index
    %49 = vector.load %arg7[%c12, %c0_26] : memref<36x256xf32, #tpu.memory_space<vmem>>, vector<4x256xf32>
    tpu.vector_store %arg7[%c12, %c0_26], %48 {strides = array<i32>} : memref<36x256xf32, #tpu.memory_space<vmem>>, vector<4x256xf32>,
    %c0_27 = arith.constant 0 : index
    %c128_28 = arith.constant 128 : index
    %50 = vector.load %arg6[%c0_27, %c128_28] : memref<4x512xf32, #tpu.memory_space<vmem>>, vector<4x256xf32>
    %c16 = arith.constant 16 : index
    %c0_29 = arith.constant 0 : index
    %51 = vector.load %arg7[%c16, %c0_29] : memref<36x256xf32, #tpu.memory_space<vmem>>, vector<4x256xf32>
    tpu.vector_store %arg7[%c16, %c0_29], %50 {strides = array<i32>} : memref<36x256xf32, #tpu.memory_space<vmem>>, vector<4x256xf32>,
    %c0_30 = arith.constant 0 : index
    %c129 = arith.constant 129 : index
    %52 = vector.load %arg6[%c0_30, %c129] : memref<4x512xf32, #tpu.memory_space<vmem>>, vector<4x256xf32>
    %cst_31 = arith.constant 0.000000e+00 : f32
    %53 = vector.shape_cast %20 : vector<1x256xi1> to vector<1x256xi1>
    %54 = vector.broadcast %53 : vector<1x256xi1> to vector<4x256xi1>
    %55 = vector.broadcast %cst_31 : f32 to vector<4x256xf32>
    %56 = arith.select %54, %52, %55 : vector<4x256xi1>, vector<4x256xf32>
    %c20 = arith.constant 20 : index
    %c0_32 = arith.constant 0 : index
    %57 = vector.load %arg7[%c20, %c0_32] : memref<36x256xf32, #tpu.memory_space<vmem>>, vector<4x256xf32>
    tpu.vector_store %arg7[%c20, %c0_32], %56 {strides = array<i32>} : memref<36x256xf32, #tpu.memory_space<vmem>>, vector<4x256xf32>,
    %c0_33 = arith.constant 0 : index
    %c143 = arith.constant 143 : index
    %58 = vector.load %arg6[%c0_33, %c143] : memref<4x512xf32, #tpu.memory_space<vmem>>, vector<4x256xf32>
    %cst_34 = arith.constant 0.000000e+00 : f32
    %59 = vector.shape_cast %18 : vector<1x256xi1> to vector<1x256xi1>
    %60 = vector.broadcast %59 : vector<1x256xi1> to vector<4x256xi1>
    %61 = vector.broadcast %cst_34 : f32 to vector<4x256xf32>
    %62 = arith.select %60, %58, %61 : vector<4x256xi1>, vector<4x256xf32>
    %c24 = arith.constant 24 : index
    %c0_35 = arith.constant 0 : index
    %63 = vector.load %arg7[%c24, %c0_35] : memref<36x256xf32, #tpu.memory_space<vmem>>, vector<4x256xf32>
    tpu.vector_store %arg7[%c24, %c0_35], %62 {strides = array<i32>} : memref<36x256xf32, #tpu.memory_space<vmem>>, vector<4x256xf32>,
    %c0_36 = arith.constant 0 : index
    %c144 = arith.constant 144 : index
    %64 = vector.load %arg6[%c0_36, %c144] : memref<4x512xf32, #tpu.memory_space<vmem>>, vector<4x256xf32>
    %c28 = arith.constant 28 : index
    %c0_37 = arith.constant 0 : index
    %65 = vector.load %arg7[%c28, %c0_37] : memref<36x256xf32, #tpu.memory_space<vmem>>, vector<4x256xf32>
    tpu.vector_store %arg7[%c28, %c0_37], %64 {strides = array<i32>} : memref<36x256xf32, #tpu.memory_space<vmem>>, vector<4x256xf32>,
    %c0_38 = arith.constant 0 : index
    %c145 = arith.constant 145 : index
    %66 = vector.load %arg6[%c0_38, %c145] : memref<4x512xf32, #tpu.memory_space<vmem>>, vector<4x256xf32>
    %cst_39 = arith.constant 0.000000e+00 : f32
    %67 = vector.shape_cast %20 : vector<1x256xi1> to vector<1x256xi1>
    %68 = vector.broadcast %67 : vector<1x256xi1> to vector<4x256xi1>
    %69 = vector.broadcast %cst_39 : f32 to vector<4x256xf32>
    %70 = arith.select %68, %66, %69 : vector<4x256xi1>, vector<4x256xf32>
    %c32 = arith.constant 32 : index
    %c0_40 = arith.constant 0 : index
    %71 = vector.load %arg7[%c32, %c0_40] : memref<36x256xf32, #tpu.memory_space<vmem>>, vector<4x256xf32>
    tpu.vector_store %arg7[%c32, %c0_40], %70 {strides = array<i32>} : memref<36x256xf32, #tpu.memory_space<vmem>>, vector<4x256xf32>,
    %c0_41 = arith.constant 0 : index
    %c0_42 = arith.constant 0 : index
    %72 = vector.load %arg7[%c0_41, %c0_42] : memref<36x256xf32, #tpu.memory_space<vmem>>, vector<36x256xf32>
    %73 = arith.truncf %72 : vector<36x256xf32> to vector<36x256xbf16>
    %cst_43 = arith.constant dense<0.000000e+00> : vector<4x256xf32>
    %74 = tpu.matmul %21, %73, %cst_43 {dimension_numbers = #tpu.dot_dimension_numbers<[1], [0], [0], [1], [0, 0, 1, 1], [], []>} : vector<4x36xbf16>, vector<36x256xbf16>, vector<4x256xf32> -> vector<4x256xf32>
    %75 = vector.broadcast %22 : vector<4x1xf32> to vector<4x256xf32>
    %76 = arith.mulf %74, %75 : vector<4x256xf32>
    %77 = vector.broadcast %23 : vector<4x1xf32> to vector<4x256xf32>
    %78 = arith.addf %76, %77 : vector<4x256xf32>
    %cst_44 = arith.constant 0.000000e+00 : f32
    %79 = vector.broadcast %cst_44 : f32 to vector<4x256xf32>
    %80 = arith.maximumf %78, %79 : vector<4x256xf32>
    %c0_45 = arith.constant 0 : index
    %c0_46 = arith.constant 0 : index
    %c0_47 = arith.constant 0 : index
    %81 = vector.load %arg5[%c0_45, %c0_46, %c0_47] : memref<1x8x256xf32, #tpu.memory_space<vmem>>, vector<1x4x256xf32>
    %82 = vector.shape_cast %81 : vector<1x4x256xf32> to vector<4x256xf32>
    %83 = vector.shape_cast %80 : vector<4x256xf32> to vector<1x4x256xf32>
    tpu.vector_store %arg5[%c0_45, %c0_46, %c0_47], %83 {strides = array<i32>} : memref<1x8x256xf32, #tpu.memory_space<vmem>>, vector<1x4x256xf32>,
    %c0_48 = arith.constant 0 : index
    %c4_49 = arith.constant 4 : index
    %c0_50 = arith.constant 0 : index
    %84 = vector.load %arg5[%c0_48, %c4_49, %c0_50] : memref<1x8x256xf32, #tpu.memory_space<vmem>>, vector<1x4x256xf32>
    %85 = vector.shape_cast %84 : vector<1x4x256xf32> to vector<4x256xf32>
    %86 = vector.shape_cast %80 : vector<4x256xf32> to vector<1x4x256xf32>
    tpu.vector_store %arg5[%c0_48, %c4_49, %c0_50], %86 {strides = array<i32>} : memref<1x8x256xf32, #tpu.memory_space<vmem>>, vector<1x4x256xf32>,
    return
  }
  func.func @transform_0(%arg0: i32) -> (i32, i32, i32) {
    %c0_i32 = arith.constant 0 : i32
    %c0_i32_0 = arith.constant 0 : i32
    %c0_i32_1 = arith.constant 0 : i32
    return %arg0, %c0_i32, %c0_i32_0 : i32, i32, i32
  }
  func.func @transform_1(%arg0: i32) -> (i32, i32) {
    %c0_i32 = arith.constant 0 : i32
    %c0_i32_0 = arith.constant 0 : i32
    %c0_i32_1 = arith.constant 0 : i32
    return %c0_i32, %c0_i32_0 : i32, i32
  }
  func.func @transform_2(%arg0: i32) -> (i32, i32) {
    %c0_i32 = arith.constant 0 : i32
    %c0_i32_0 = arith.constant 0 : i32
    %c0_i32_1 = arith.constant 0 : i32
    return %c0_i32, %c0_i32_0 : i32, i32
  }
  func.func @transform_3(%arg0: i32) -> (i32, i32) {
    %c0_i32 = arith.constant 0 : i32
    %c0_i32_0 = arith.constant 0 : i32
    %c0_i32_1 = arith.constant 0 : i32
    return %c0_i32, %c0_i32_0 : i32, i32
  }
  func.func @transform_4(%arg0: i32) -> (i32, i32, i32) {
    %c0_i32 = arith.constant 0 : i32
    %c0_i32_0 = arith.constant 0 : i32
    %c0_i32_1 = arith.constant 0 : i32
    return %arg0, %c0_i32, %c0_i32_0 : i32, i32, i32
  }
}

</mosaic_0001>

<bundles_post_ra>
// kernel: ghost_module_forward.1
= control target key start
LH: loop header
LB: loop body
LE: loop exit
PB: predicated region body
PF: predicated region fallthrough
CT: control target
= control target key end

     0   :  { %s683_s15 = smov 0   ;;  %s757_s0 = inlined_call_operand.vmem [shape: bf16[2,4,256], index: 0, kind: input, shape index: {}]   ;;  %s758_s1 = inlined_call_operand.vmem [shape: bf16[4,36], index: 1, kind: input, shape index: {}]   ;;  %s759_s2 = inlined_call_operand.vmem [shape: f32[4,1], index: 2, kind: input, shape index: {}]   ;;  %s760_s3 = inlined_call_operand.vmem [shape: f32[4,1], index: 3, kind: input, shape index: {}]   ;;  %s761_s4 = inlined_call_operand.vmem [shape: f32[2,8,256], index: 4, kind: output, shape index: {}]  }
   0x1 LB: > { %s571_s16 = sadd.s32 4294967295, %s646_s15   ;;  %p575_p0 = scmp.ge.s32.totalorder %s646_s15, 1  ;;  %s646_s15 = sphi %s683_s15, %s14_s15  }
   0x2   : > { %p162_p1 = scmp.lt.s32.totalorder %s646_s15, 3 }
   0x4   : > { %p163_p2 = pnand %p575_p0, %p162_p1 }
   0x5   : > { %p188_p3 = scmp.lt.s32.totalorder (!%p163_p2), %s571_s16, 1  ;;  %v648_v0 = vmov (!%p163_p2), 0.0   ;;  %s649_s21 = smov (!%p163_p2), 1   ;;  %v657_v22 = vmov (!%p163_p2), 0   ;;  %v231_v23 = vld [vmem:[%s759_s2] sm:$0xf] (!%p163_p2)  ;;  %v199_v25 = vlaneseq (!%p163_p2) }
   0x6   : > { %166 = sbr.rel (%p163_p2) target bundleno = 416 (0x1a0), region = 36  ;;  %233 = vst [vmem:[#allocation2] sm:$0xff] (!%p163_p2), %v648_v0  ;;  %234 = vst [vmem:[#allocation2 + $0x8] sm:$0xff] (!%p163_p2), %v648_v0  ;;  %s650_s22 = smov (!%p163_p2), 17   ;;  %481 = vmatprep.mubr.bf16.mxu0 (!%p163_p2), %v657_v22  ;;  %634 = vset.pattern.permute.xlu0 (!%p163_p2), %v657_v22  ;;  %v232_v24 = vld [vmem:[%s760_s3] sm:$0xf] (!%p163_p2) }
   0x7   : > { %s651_s23 = smov (!%p163_p2), 16   ;;  %s652_s24 = smov (!%p163_p2), 15   ;;  %635 = vset.pattern.permute.xlu1 (!%p163_p2), %v657_v22  ;;  %v200_v26 = vand.u32 (!%p163_p2), 127, %v199_v25  ;;  %vm316_vm2 = vcmask (!%p163_p2), 7168   ;;  %vm253_vm3 = vcmask (!%p163_p2), 138240   ;;  %vm296_vm6 = vcmask (!%p163_p2), 121856  }
   0x8   : > { %s653_s25 = smov (!%p163_p2), 127   ;;  %s654_s26 = smov (!%p163_p2), 113   ;;  %vm274_vm7 = vcmask (!%p163_p2), 130048   ;;  %vm348_vm8 = vcmask (!%p163_p2), 1039360   ;;  %vm374_vm9 = vcmask (!%p163_p2), 924672   ;;  %vm395_vm10 = vcmask (!%p163_p2), 916480  }
   0x9   : > { %s655_s27 = smov (!%p163_p2), 112   ;;  %s656_s28 = smov (!%p163_p2), 111   ;;  %v201_v27 = vadd.s32 (!%p163_p2), 128, %v200_v26  ;;  %v206_v30 = vand.u32 (!%p163_p2), 15, %v200_v26  ;;  %vm413_vm11 = vcmask (!%p163_p2), 908288   ;;  %vm442_vm12 = vcmask (!%p163_p2), 1041408  }
   0xa   : > { %v230_v43 = vld [vmem:[%s758_s1] sm:$0x3] (!%p163_p2)  ;;  %vm438_vm13 = vcmask (!%p163_p2), 293888  }
   0xb   : > { %v213_v31 = vand.u32 (!%p163_p2), 15, %v201_v27  ;;  %vm703_vm0 = vcmp.ge.s32.totalorder (!%p163_p2), %v206_v30, 1  ;;  %vm711_vm4 = vcmp.lt.s32.totalorder (!%p163_p2), %v206_v30, 15 }
   0xd   : > { %s771_s16 = smov (!%p188_p3, %s571_s16), 1  ;;  %v338_v14 = vld [vmem:[#allocation2 + $0xc] sm:$0xf]  ;;  %vm707_vm1 = vcmp.ge.s32.totalorder %v213_v31, 1  ;;  %vm715_vm5 = vcmp.lt.s32.totalorder %v213_v31, 15 }
   0xe   : > { %s584_s17 = sshll.u32 %s771_s16, 2  ;;  %v364_v16 = vld [vmem:[#allocation2 + $0xc] sm:$0xf]  ;;  %s585_s9 = sshll.u32 %s771_s16, 4 }
   0xf   : > { %s192_s20 = scalar_lea.vmem %s757_s0, %s584_s17  ;;  %v639_v19 = vld [vmem:[#allocation2 + $0xc] ss:$0 sps:$4 sm:$0xff]   ;;  %s197_s12 = scalar_lea.vmem %s761_s4, %s585_s9 }
  0x10   : > { %v235_v1 = vld [vmem:[%s192_s20] sm:$0xf]  ;;  %v403_v20 = vld [vmem:[#allocation2 + $0xc] sm:$0xf] }
  0x11   : > { %v236_v2 = vunpack.c.l.bf16 %v235_v1 }
  0x13   : > { %237 = vst [vmem:[#allocation2 + $0x4] sm:$0xff] %v236_v2  ;;  %v341_v3 = vcombine.high %v236_v2, %v236_v2  ;;  %335 = vst [vmem:[#allocation3 + $0x20] sm:$0xf] %v236_v2  ;;  %v619_v15 = vpack.i.bf16 %v236_v2, %v338_v14  ;;  %v624_v17 = vpack.i.bf16 %v236_v2, %v364_v16 }
  0x14   : > { %v387_v18 = vcombine.low %v236_v2, %v236_v2  ;;  %v629_v21 = vpack.i.bf16 %v403_v20, %v236_v2 }
  0x15   : > { %336 = vst [vmem:[#allocation3 + $0x28] sm:$0xf] %v341_v3 }
  0x1a   : > { %v305_v4 = vld [vmem:[#allocation2] sm:$0xff]  ;;  %v306_v5 = vld [vmem:[#allocation2 + $0x8] sm:$0xf] }
  0x1b   : > { %v239_v6 = vld [vmem:[#allocation2 + $0x8] sm:$0xf]  ;;  %v604_v7 = vpack.i.bf16 %v305_v4, %v306_v5  ;;  %v309_v11 = vcombine.high %v305_v4, %v305_v4  ;;  %v266_v13 = vcombine.low %v305_v4, %v305_v4 }
  0x1c   : > { %v609_v8 = vpack.i.bf16 %v305_v4, %v239_v6  ;;  %v282_v9 = vld [vmem:[#allocation2 + $0x8] sm:$0xf] }
  0x1d   : > { %605 = vrot.lane.b32.xlu0 %v604_v7, %s649_s21  ;;  %v614_v10 = vpack.i.bf16 %v305_v4, %v282_v9  ;;  %v638_v12 = vld [vmem:[#allocation2 + $0x8] ss:$0 sps:$4 sm:$0xff]  }
  0x1e   : > { %610 = vrot.lane.b32.xlu1 %v609_v8, %s650_s22 }
  0x21   : > { %270 = vrot.lane.b32.xlu0 %v305_v4, %s651_s23 }
  0x22   : > { %615 = vrot.lane.b32.xlu1 %v614_v10, %s652_s24 }
  0x25   : > { %312 = vrot.lane.b32.xlu0 %v309_v11, %s649_s21 }
  0x26   : > { %249 = vrot.lane.b32.xlu1 %v309_v11, %s650_s22 }
  0x29   : > { %292 = vrot.lane.b32.xlu0 %v309_v11, %s652_s24 }
  0x2a   : > { %272 = vrot.lane.b32.xlu1 %v638_v12, %s651_s23 }
  0x2d   : > { %268 = vrot.lane.b32.xlu0 %v266_v13, %s651_s23 }
  0x2e   : > { %344 = vrot.lane.b32.xlu1 %v341_v3, %s653_s25 }
  0x31   : > { %620 = vrot.lane.b32.xlu0 %v619_v15, %s653_s25 }
  0x32   : > { %370 = vrot.lane.b32.xlu1 %v341_v3, %s654_s26 }
  0x35   : > { %625 = vrot.lane.b32.xlu0 %v624_v17, %s654_s26 }
  0x36   : > { %391 = vrot.lane.b32.xlu1 %v236_v2, %s655_s27 }
  0x39   : > { %393 = vrot.lane.b32.xlu0 %v639_v19, %s655_s27 }
  0x3a   : > { %389 = vrot.lane.b32.xlu1 %v387_v18, %s655_s27 }
  0x3d   : > { %630 = vrot.lane.b32.xlu0 %v629_v21, %s656_s28 }
  0x3e   : > { %409 = vrot.lane.b32.xlu1 %v341_v3, %s656_s28 }
  0x41   : > { %492 = vperm.xlu0 %634, %v231_v23  }
  0x42   : > { %499 = vperm.xlu1 %635, %v232_v24  }
  0x8f   : > { %v606_v28 = vpop.permute.xlu0 %605 }
  0x90   : > { %v611_v29 = vpop.permute.xlu1 %610  ;;  %v608_v36 = vunpack.i.h.bf16 %v606_v28  ;;  %v607_v37 = vunpack.i.l.bf16 %v606_v28 }
  0x91   : > { %v613_v38 = vunpack.i.h.bf16 %v611_v29  ;;  %v612_v39 = vunpack.i.l.bf16 %v611_v29 }
  0x93   : > { %v271_v32 = vpop.permute.xlu0 %270 }
  0x94   : > { %v616_v33 = vpop.permute.xlu1 %615 }
  0x95   : > { %v618_v52 = vunpack.i.h.bf16 %v616_v33  ;;  %v617_v53 = vunpack.i.l.bf16 %v616_v33 }
  0x97   : > { %v313_v40 = vpop.permute.xlu0 %312 }
  0x98   : > { %v250_v41 = vpop.permute.xlu1 %249  ;;  %v317_v44 = vsel %vm316_vm2, %v608_v36, %v313_v40  ;;  %v318_v45 = vsel %vm316_vm2, %v313_v40, %v607_v37 }
  0x99   : > { %v254_v46 = vsel %vm253_vm3, %v613_v38, %v250_v41  ;;  %v255_v47 = vsel %vm253_vm3, %v250_v41, %v612_v39  ;;  %v321_v48 = vsel %vm703_vm0, %v317_v44, 0.0  ;;  %v322_v49 = vsel %vm707_vm1, %v318_v45, 0.0 }
  0x9a   : > { %v258_v50 = vsel %vm703_vm0, %v254_v46, 0.0  ;;  %v259_v51 = vsel %vm707_vm1, %v255_v47, 0.0  ;;  %v325_v54 = vrot.slane %v321_v48, 4  ;;  %v326_v55 = vrot.slane %v322_v49, 4 }
  0x9b   : > { %260 = vst [vmem:[#allocation3] sm:$0xf] %v258_v50  ;;  %261 = vst [vmem:[#allocation3 + $0x8] sm:$0xf] %v259_v51  ;;  %v293_v56 = vpop.permute.xlu0 %292 }
  0x9c   : > { %v273_v57 = vpop.permute.xlu1 %272  ;;  %329 = vst [vmem:[#allocation3 + $0x10] sm:$0xf0] %v325_v54  ;;  %330 = vst [vmem:[#allocation3 + $0x18] sm:$0xf0] %v326_v55  ;;  %v297_v58 = vsel %vm296_vm6, %v618_v52, %v293_v56  ;;  %v298_v59 = vsel %vm296_vm6, %v293_v56, %v617_v53 }
  0x9d   : > { %v276_v60 = vsel %vm274_vm7, %v271_v32, %v273_v57  ;;  %v301_v61 = vsel %vm711_vm4, %v297_v58, 0.0  ;;  %v302_v62 = vsel %vm715_vm5, %v298_v59, 0.0 }
  0x9e   : > { %280 = vst [vmem:[#allocation3 + $0x8] sm:$0xf0] %v276_v60  ;;  %303 = vst [vmem:[#allocation3 + $0x10] sm:$0xf] %v301_v61 }
  0x9f   : > { %304 = vst [vmem:[#allocation3 + $0x18] sm:$0xf] %v302_v62  ;;  %v269_v63 = vpop.permute.xlu0 %268 }
  0xa0   : > { %v345_v0 = vpop.permute.xlu1 %344  ;;  %v275_v1 = vsel %vm274_vm7, %v269_v63, %v271_v32 }
  0xa1   : > { %279 = vst [vmem:[#allocation3] sm:$0xf0] %v275_v1 }
  0xa3   : > { %v621_v2 = vpop.permute.xlu0 %620 }
  0xa4   : > { %v371_v3 = vpop.permute.xlu1 %370  ;;  %v623_v4 = vunpack.i.h.bf16 %v621_v2  ;;  %v622_v5 = vunpack.i.l.bf16 %v621_v2 }
  0xa5   : > { %v423_v6 = vld [vmem:[#allocation3 + $0x8] sm:$0xff]  ;;  %v424_v20 = vld [vmem:[#allocation3 + $0x10] sm:$0xff] }
  0xa6   : > { %v425_v7 = vld [vmem:[#allocation3 + $0x18] sm:$0xff]  ;;  %v349_v8 = vsel %vm348_vm8, %v623_v4, %v345_v0  ;;  %v350_v9 = vsel %vm348_vm8, %v345_v0, %v622_v5 }
  0xa7   : > { %v433_v10 = vpack.c.bf16 %v425_v7, %v423_v6  ;;  %v353_v11 = vsel %vm711_vm4, %v349_v8, 0.0  ;;  %v354_v12 = vsel %vm715_vm5, %v350_v9, 0.0  ;;  %v626_v13 = vpop.permute.xlu0 %625 }
  0xa8   : > { %v392_v14 = vpop.permute.xlu1 %391  ;;  %v357_v15 = vrot.slane %v353_v11, 4  ;;  %v358_v16 = vrot.slane %v354_v12, 4  ;;  %v628_v17 = vunpack.i.h.bf16 %v626_v13  ;;  %v627_v18 = vunpack.i.l.bf16 %v626_v13  ;;  %v422_v19 = vld [vmem:[#allocation3] sm:$0xff] }
  0xa9   : > { %449 = vmatprep.subr.bf16.mxu0 %v433_v10  ;;  %v432_v21 = vpack.c.bf16 %v424_v20, %v422_v19 }
  0xaa   : > { %361 = vst [vmem:[#allocation3 + $0x20] sm:$0xf0] %v357_v15  ;;  %362 = vst [vmem:[#allocation3 + $0x28] sm:$0xf0] %v358_v16  ;;  %v375_v22 = vsel %vm374_vm9, %v628_v17, %v371_v3  ;;  %v376_v23 = vsel %vm374_vm9, %v371_v3, %v627_v18 }
  0xab   : > { %v379_v24 = vsel %vm703_vm0, %v375_v22, 0.0  ;;  %v380_v25 = vsel %vm707_vm1, %v376_v23, 0.0  ;;  %v394_v26 = vpop.permute.xlu0 %393  ;;  %450 = vmatpush1.bf16.msra.mxu0 %v432_v21 }
  0xac   : > { %v390_v27 = vpop.permute.xlu1 %389  ;;  %381 = vst [vmem:[#allocation3 + $0x30] sm:$0xf] %v379_v24  ;;  %382 = vst [vmem:[#allocation3 + $0x38] sm:$0xf] %v380_v25  ;;  %v397_v28 = vsel %vm395_vm10, %v392_v14, %v394_v26 }
  0xad   : > { %v396_v29 = vsel %vm395_vm10, %v390_v27, %v392_v14  ;;  %401 = vst [vmem:[#allocation3 + $0x38] sm:$0xf0] %v397_v28 }
  0xae   : > { %400 = vst [vmem:[#allocation3 + $0x30] sm:$0xf0] %v396_v29 }
  0xaf   : > { %v631_v30 = vpop.permute.xlu0 %630 }
  0xb0   : > { %v410_v31 = vpop.permute.xlu1 %409  ;;  %v633_v32 = vunpack.i.h.bf16 %v631_v30  ;;  %v632_v33 = vunpack.i.l.bf16 %v631_v30 }
  0xb1   : > { %v427_v38 = vld [vmem:[#allocation3 + $0x28] sm:$0xff]  ;;  %v426_v40 = vld [vmem:[#allocation3 + $0x20] sm:$0xff] }
  0xb2   : > { %v414_v36 = vsel %vm413_vm11, %v632_v33, %v410_v31  ;;  %v415_v34 = vsel %vm413_vm11, %v410_v31, %v633_v32 }
  0xb3   : > { %v418_v35 = vsel %vm711_vm4, %v414_v36, 0.0  ;;  %v419_v37 = vsel %vm715_vm5, %v415_v34, 0.0 }
  0xb4   : > { %420 = vst [vmem:[#allocation3 + $0x40] sm:$0xf] %v418_v35  ;;  %421 = vst [vmem:[#allocation3 + $0x48] sm:$0xf] %v419_v37  ;;  %v429_v39 = vld [vmem:[#allocation3 + $0x38] sm:$0xff] }
  0xb5   : > { %v428_v41 = vld [vmem:[#allocation3 + $0x30] sm:$0xff]  ;;  %v435_v44 = vpack.c.bf16 %v429_v39, %v427_v38 }
  0xb6   : > { %v434_v45 = vpack.c.bf16 %v428_v41, %v426_v40 }
  0xb7   : > { %451 = vmatprep.subr.bf16.mxu0 %v435_v44 }
  0xb8   : > { %452 = vmatpush1.bf16.msra.mxu0 %v434_v45 }
  0xbb   : > { %v431_v46 = vld [vmem:[#allocation3 + $0x48] sm:$0xf]  ;;  %v430_v47 = vld [vmem:[#allocation3 + $0x40] sm:$0xf] }
  0xbc   : > { %v437_v48 = vpack.c.bf16 %v431_v46, %v431_v46  ;;  %v436_v42 = vpack.c.bf16 %v430_v47, %v430_v47 }
  0xbe   : > { %580 = vmatprep.subr.msk.bf16.mxu0 %vm442_vm12, %v437_v48  ;;  %v444_v49 = vsel %vm442_vm12, %v436_v42, 0 }
  0xbf   : > { %454 = vmatpush1.bf16.msra.mxu0 %v444_v49 }
  0xc0   : > { %v493_v50 = vpop.permute.xlu0 %492 }
  0xc1   : > { %v500_v52 = vpop.permute.xlu1 %499 }
  0xc2   : > { %581 = vmatmul.mubr.msk.bf16.vlgmr.msra.gmra.mrb[0].mxu0 %vm438_vm13, %v230_v43 }
 0x195   : > { %v483_v51 = vpop.f32.mrb[0].mxu0 }
 0x196   : > { %v495_v53 = vmul.f32 %v493_v50, %v483_v51  ;;  %v485_v54 = vpop.f32.mrb[1].mxu0 }
 0x197   : > { %v496_v55 = vmul.f32 %v493_v50, %v485_v54  ;;  %v487_v56 = vpop.f32.mrb[2].mxu0 }
 0x198   : > { %v502_v57 = vadd.f32 %v500_v52, %v495_v53  ;;  %v488_v58 = vpop.f32.mrb[3].mxu0 }
 0x199   : > { %v503_v59 = vadd.f32 %v500_v52, %v496_v55 }
 0x19a   : > { %v504_v60 = vmax.f32 %v502_v57, 0.0 }
 0x19b   : > { %v505_v61 = vmax.f32 %v503_v59, 0.0 }
 0x19c   : > { %506 = vst [vmem:[%s197_s12] sm:$0xf] %v504_v60  ;;  %v510_v62 = vrot.slane %v504_v60, 4 }
 0x19d   : > { %507 = vst [vmem:[%s197_s12 + $0x8] sm:$0xf] %v505_v61  ;;  %v511_v63 = vrot.slane %v505_v61, 4 }
 0x19e   : > { %514 = vst [vmem:[%s197_s12] sm:$0xf0] %v510_v62 }
 0x19f   : > { %515 = vst [vmem:[%s197_s12 + $0x8] sm:$0xf0] %v511_v63 }
 0x1a0 PF: > { %s14_s15 = sadd.s32 1, %s646_s15  }
 0x1a1   : > { %p11_p4 = scmp.ge.s32.totalorder %s14_s15, 4  }
 0x1a3   :  { %13 = sbr.rel (!%p11_p4) target bundleno = 1 (0x1), region = 66 }

</bundles_post_ra>
